<compile_context>
chip_gen: v7x
topology: tpu7x:2x2x1
jax: 0.10.0
libtpu: 0.0.40
codegen_flags: <defaults>
</compile_context>

<pallas_src>
import numpy as np
import jax
import jax.numpy as jnp
from jax.experimental import pallas as pl
from jax.experimental.pallas import tpu as pltpu


# ----------------------------------------------------------------------------
# Deterministic precompute of the chroma filter bank (replicates
# librosa.filters.chroma with base_c=True, then transposed as in diffsptk).
# ----------------------------------------------------------------------------
def _hz_to_octs(frequencies, tuning=0.0, bins_per_octave=12):
    a440 = 440.0 * 2.0 ** (tuning / bins_per_octave)
    return np.log2(frequencies / (a440 / 16.0))


def _l2_normalize_cols(wts):
    # librosa.util.normalize(wts, norm=2, axis=0)
    length = np.sqrt(np.sum(np.abs(wts) ** 2, axis=0, keepdims=True))
    tiny = np.finfo(wts.dtype).tiny
    length = np.where(length < tiny, 1.0, length)
    return wts / length


def chroma_filterbank(sr, n_fft, n_chroma=12, tuning=0.0, ctroct=5.0,
                      octwidth=2, base_c=True, dtype=np.float64):
    frequencies = np.linspace(0, sr, n_fft, endpoint=False)[1:]
    frqbins = n_chroma * _hz_to_octs(frequencies, tuning=tuning,
                                     bins_per_octave=n_chroma)
    frqbins = np.concatenate(([frqbins[0] - 1.5 * n_chroma], frqbins))
    binwidthbins = np.concatenate(
        (np.maximum(frqbins[1:] - frqbins[:-1], 1.0), [1.0]))
    D = np.subtract.outer(frqbins, np.arange(0, n_chroma, dtype="d")).T
    n_chroma2 = np.round(float(n_chroma) / 2)
    D = np.remainder(D + n_chroma2 + 10 * n_chroma, n_chroma) - n_chroma2
    wts = np.exp(-0.5 * (2 * D / np.tile(binwidthbins, (n_chroma, 1))) ** 2)
    wts = _l2_normalize_cols(wts)
    if octwidth is not None:
        wts *= np.tile(
            np.exp(-0.5 * (((frqbins / n_chroma - ctroct) / octwidth) ** 2)),
            (n_chroma, 1))
    if base_c:
        wts = np.roll(wts, -3 * (n_chroma // 12), axis=0)
    return np.ascontiguousarray(wts[:, : int(1 + n_fft / 2)], dtype=dtype)


# ----------------------------------------------------------------------------
# Pallas kernel: y = (x or sqrt(x)) @ H ; y *= 1 / max(||y||_norm, eps)
# ----------------------------------------------------------------------------
def _make_chroma_kernel(use_power, norm, lhs_dtype, eps=1e-12,
                        approx_recip=False):
    def kernel(x_ref, h_ref, o_ref):
        x = x_ref[...]
        if use_power:
            # astype to the same dtype is a no-op; bf16 input stays bf16 so
            # the MXU sees a bf16 x bf16 matmul with f32 accumulation.
            lhs = x.astype(lhs_dtype)
        else:
            # Amplitude path: sqrt in f32 (v5e VPU/EUP has no bf16).  Clamp
            # to >= 0 so padded/garbage rows of a partial trailing tile never
            # feed negatives into sqrt (NaN noise stays in discarded rows).
            lhs = jnp.sqrt(jnp.maximum(x.astype(jnp.float32), 0.0))
        y = jnp.dot(lhs, h_ref[...], preferred_element_type=jnp.float32)

        if norm == float("inf"):
            denom = jnp.max(jnp.abs(y), axis=-1, keepdims=True)
        elif norm == float("-inf"):
            # Note: min(|y|) can legitimately be ~0 for a silent chroma bin,
            # giving denom=eps and very large outputs (matches torch).
            denom = jnp.min(jnp.abs(y), axis=-1, keepdims=True)
        elif norm == 2.0:
            # Special-case p=2: VPU + one sqrt, avoid float pow.
            denom = jnp.sqrt(jnp.sum(y * y, axis=-1, keepdims=True))
        elif norm == 1.0:
            denom = jnp.sum(jnp.abs(y), axis=-1, keepdims=True)
        else:
            denom = jnp.sum(jnp.abs(y) ** norm, axis=-1,
                            keepdims=True) ** (1.0 / norm)

        d = jnp.maximum(denom, eps)
        if approx_recip:
            inv = pl.reciprocal(d, approx=True)   # EUP slot, ~2^-12 rel err
        else:
            inv = 1.0 / d
        o_ref[...] = (y * inv).astype(o_ref.dtype)

    return kernel


def _round_up(n, m):
    return ((n + m - 1) // m) * m


def _choose_frame_tile(B, F, C, in_itemsize, out_itemsize):
    """Byte-sized frame tile with sublane packing + VMEM guard."""
    # Sublane packing multiple for the input dtype.
    if in_itemsize >= 4:
        row_mult = 8
    elif in_itemsize == 2:
        row_mult = 16
    else:
        row_mult = 32

    b_pad = _round_up(B, row_mult)

    # Target ~2 MiB of input per grid step: amortizes the ~0.35 us fixed
    # per-step overhead on every generation while staying far below scoped
    # VMEM defaults once double-buffered.
    target_bytes = 2 * 1024 * 1024
    tb = _round_up(max(row_mult, target_bytes // max(1, F * in_itemsize)),
                   row_mult)

    # Keep the pipeline warm and let v7x's two TensorCores split the
    # "parallel" frame axis: force >= 8 grid steps when there is enough work.
    min_steps = 8
    if b_pad >= 2 * min_steps * row_mult:
        tb = min(tb, _round_up(pl.cdiv(b_pad, min_steps), row_mult))

    tb = max(row_mult, min(tb, b_pad))

    # VMEM guard (2x double-buffered x + 2x double-buffered out + H),
    # conservative so v5e's 16 MiB scoped-VMEM default is never exceeded and
    # no vmem_limit override is needed on any generation.
    vmem_budget = 12 * 1024 * 1024

    def vmem_bytes(t):
        return 2 * t * F * in_itemsize + 2 * t * C * out_itemsize + F * C * 4

    while tb > row_mult and vmem_bytes(tb) > vmem_budget:
        tb = max(row_mult, _round_up(tb // 2, row_mult))
    return tb


class ChromaFilterBankAnalysis:
    """JAX/Pallas equivalent of diffsptk.ChromaFilterBankAnalysis."""

    def __init__(self, n_channel, fft_length, sample_rate,
                 norm=float("inf"), use_power=True, approx_normalize=False):
        assert 1 <= n_channel
        assert 2 <= fft_length
        assert 1 <= sample_rate
        self.fft_length = fft_length
        self.norm = norm
        self.use_power = use_power
        self.approx_normalize = approx_normalize
        # H: (L/2+1, C), float32 master copy; per-dtype casts are cached.
        H = chroma_filterbank(sr=sample_rate, n_fft=fft_length,
                              n_chroma=n_channel, base_c=True,
                              dtype=np.float64).T
        self.H = jnp.asarray(H, dtype=jnp.float32)
        self._H_by_dtype = {jnp.dtype(jnp.float32): self.H}

    def _h_as(self, dtype):
        key = jnp.dtype(dtype)
        h = self._H_by_dtype.get(key)
        if h is None:
            h = self.H.astype(key)
            self._H_by_dtype[key] = h
        return h

    def __call__(self, x):
        F = self.fft_length // 2 + 1
        assert x.shape[-1] == F, "dimension of spectrum mismatch"
        C = self.H.shape[-1]

        lead = x.shape[:-1]
        B = int(np.prod(lead)) if lead else 1
        x2d = jnp.reshape(x, (B, F))

        in_itemsize = jnp.dtype(x.dtype).itemsize
        out_itemsize = in_itemsize  # output keeps the input dtype

        # bf16 fast path: feed the MXU native bf16 (halves HBM reads); the
        # sqrt path and every other dtype go through f32.
        if self.use_power and x.dtype == jnp.bfloat16:
            mxu_dtype = jnp.bfloat16
        else:
            mxu_dtype = jnp.float32
        Hk = self._h_as(mxu_dtype)

        TB = _choose_frame_tile(B, F, C, in_itemsize, out_itemsize)
        grid = (pl.cdiv(B, TB),)

        kernel = _make_chroma_kernel(self.use_power, self.norm, mxu_dtype,
                                     approx_recip=self.approx_normalize)
        out2d = pl.pallas_call(
            kernel,
            out_shape=jax.ShapeDtypeStruct((B, C), x.dtype),
            grid=grid,
            in_specs=[
                pl.BlockSpec((TB, F), lambda i: (i, 0)),
                pl.BlockSpec((F, C), lambda i: (0, 0)),
            ],
            out_specs=pl.BlockSpec((TB, C), lambda i: (i, 0)),
            compiler_params=pltpu.CompilerParams(
                dimension_semantics=("parallel",)),
        )(x2d, Hk)

        return jnp.reshape(out2d, lead + (C,))


# ----------------------------------------------------------------------------
# Pure-JAX reference for correctness checking.
# ----------------------------------------------------------------------------
def _reference(x, H, norm, use_power, eps=1e-12):
    y = x if use_power else jnp.sqrt(x)
    y = jnp.matmul(y.astype(jnp.float32), H.astype(jnp.float32))
    if norm == float("inf"):
        denom = jnp.max(jnp.abs(y), axis=-1, keepdims=True)
    elif norm == float("-inf"):
        denom = jnp.min(jnp.abs(y), axis=-1, keepdims=True)
    else:
        denom = jnp.sum(jnp.abs(y) ** norm, axis=-1,
                        keepdims=True) ** (1.0 / norm)
    return y / jnp.maximum(denom, eps)


if __name__ == "__main__":
    n_channel = 12
    fft_length = 128
    sample_rate = 16000
    F = fft_length // 2 + 1

    key = jax.random.PRNGKey(0)
    k1, k2, k3 = jax.random.split(key, 3)

    # Case 1: f32 power spectrum, inf-norm (default), shape (2, 8, 65).
    module = ChromaFilterBankAnalysis(n_channel, fft_length, sample_rate,
                                      norm=float("inf"), use_power=True)
    x = jax.random.uniform(k1, (2, 8, F), dtype=jnp.float32,
                           minval=0.0, maxval=1.0)
    y = jax.block_until_ready(module(x))
    y_ref = _reference(x, module.H, module.norm, module.use_power)
    np.testing.assert_allclose(np.asarray(y), np.asarray(y_ref),
                               rtol=1e-5, atol=1e-5)
    assert y.shape == (2, 8, n_channel)

    # Case 2: amplitude (sqrt) path, L2 norm, B=15 rows (partial trailing tile).
    mod2 = ChromaFilterBankAnalysis(n_channel, fft_length, sample_rate,
                                    norm=2.0, use_power=False)
    x2 = jax.random.uniform(k2, (3, 5, F), dtype=jnp.float32,
                            minval=1e-3, maxval=1.0)
    y2 = jax.block_until_ready(mod2(x2))
    y2_ref = _reference(x2, mod2.H, 2.0, False)
    np.testing.assert_allclose(np.asarray(y2), np.asarray(y2_ref),
                               rtol=1e-5, atol=1e-5)
    assert y2.shape == (3, 5, n_channel)

    # Case 3: bf16 fast path (native bf16 MXU LHS/RHS, f32 accumulation).
    x3 = jax.random.uniform(k3, (2, 16, F), dtype=jnp.float32,
                            minval=0.0, maxval=1.0).astype(jnp.bfloat16)
    y3 = jax.block_until_ready(module(x3))
    y3_ref = _reference(x3.astype(jnp.float32), module.H, module.norm, True)
    np.testing.assert_allclose(np.asarray(y3, dtype=np.float32),
                               np.asarray(y3_ref), rtol=3e-2, atol=3e-2)
    assert y3.shape == (2, 16, n_channel)

    print("KERNEL_OK")
</pallas_src>

<mosaic_0001>
module attributes {stable_mosaic.version = 11 : i64} {
  func.func @kernel(%arg0: i32, %arg1: memref<16x65xf32, #tpu.memory_space<vmem>>, %arg2: memref<65x12xf32, #tpu.memory_space<vmem>>, %arg3: memref<16x12xf32, #tpu.memory_space<vmem>>) attributes {dimension_semantics = [#tpu.dimension_semantics<parallel>], iteration_bounds = array<i64: 1>, scalar_prefetch = 0 : i64, scratch_operands = 0 : i64, tpu.core_type = #tpu.core_type<tc>, window_params = [{transform_indices = @transform_0, window_bounds = array<i64: 16, 65>}, {pipeline_mode = #tpu.pipeline_mode<synchronous>, transform_indices = @transform_1, window_bounds = array<i64: 65, 12>}, {transform_indices = @transform_2, window_bounds = array<i64: 16, 12>}]} {
    %c0 = arith.constant 0 : index
    %c0_0 = arith.constant 0 : index
    %0 = vector.load %arg1[%c0, %c0_0] : memref<16x65xf32, #tpu.memory_space<vmem>>, vector<16x65xf32>
    %c0_1 = arith.constant 0 : index
    %c0_2 = arith.constant 0 : index
    %1 = vector.load %arg2[%c0_1, %c0_2] : memref<65x12xf32, #tpu.memory_space<vmem>>, vector<65x12xf32>
    %cst = arith.constant dense<0.000000e+00> : vector<16x12xf32>
    %2 = tpu.matmul %0, %1, %cst {dimension_numbers = #tpu.dot_dimension_numbers<[1], [0], [0], [1], [0, 0, 1, 1], [], []>} : vector<16x65xf32>, vector<65x12xf32>, vector<16x12xf32> -> vector<16x12xf32>
    %3 = math.absf %2 : vector<16x12xf32>
    %cst_3 = arith.constant dense<0xFF800000> : vector<16xf32>
    %4 = vector.multi_reduction <maximumf>, %3, %cst_3 [1] : vector<16x12xf32> to vector<16xf32>
    %5 = vector.shape_cast %4 : vector<16xf32> to vector<16x1xf32>
    %cst_4 = arith.constant 9.99999996E-13 : f32
    %6 = vector.broadcast %cst_4 : f32 to vector<16x1xf32>
    %7 = arith.maximumf %5, %6 : vector<16x1xf32>
    %cst_5 = arith.constant 1.000000e+00 : f32
    %8 = vector.broadcast %cst_5 : f32 to vector<16x1xf32>
    %9 = arith.divf %8, %7 : vector<16x1xf32>
    %10 = vector.broadcast %9 : vector<16x1xf32> to vector<16x12xf32>
    %11 = arith.mulf %2, %10 : vector<16x12xf32>
    %c0_6 = arith.constant 0 : index
    %c0_7 = arith.constant 0 : index
    %12 = vector.load %arg3[%c0_6, %c0_7] : memref<16x12xf32, #tpu.memory_space<vmem>>, vector<16x12xf32>
    tpu.vector_store %arg3[%c0_6, %c0_7], %11 {strides = array<i32>} : memref<16x12xf32, #tpu.memory_space<vmem>>, vector<16x12xf32>,
    return
  }
  func.func @transform_0(%arg0: i32) -> (i32, i32) {
    %c0_i32 = arith.constant 0 : i32
    %c0_i32_0 = arith.constant 0 : i32
    return %arg0, %c0_i32 : i32, i32
  }
  func.func @transform_1(%arg0: i32) -> (i32, i32) {
    %c0_i32 = arith.constant 0 : i32
    %c0_i32_0 = arith.constant 0 : i32
    %c0_i32_1 = arith.constant 0 : i32
    return %c0_i32, %c0_i32_0 : i32, i32
  }
  func.func @transform_2(%arg0: i32) -> (i32, i32) {
    %c0_i32 = arith.constant 0 : i32
    %c0_i32_0 = arith.constant 0 : i32
    return %arg0, %c0_i32 : i32, i32
  }
}

</mosaic_0001>

<bundles_post_ra>
// kernel: tpu_custom_call.1
= control target key start
LH: loop header
LB: loop body
LE: loop exit
PB: predicated region body
PF: predicated region fallthrough
CT: control target
= control target key end

     0   :  { %vm23_vm0 = vcmask 531456   ;;  %s295_s0 = inlined_call_operand.vmem [shape: f32[16,65], index: 0, kind: input, shape index: {}]   ;;  %s296_s1 = inlined_call_operand.vmem [shape: f32[65,12], index: 1, kind: input, shape index: {}]   ;;  %s297_s2 = inlined_call_operand.hbm [shape: f32[16,12], index: 2, kind: output, shape index: {}]  }
   0x1   :  { %v14_v0 = vld [vmem:[%s296_s1] sm:$0xff]  ;;  %v15_v1 = vld [vmem:[%s296_s1 + $0x8] sm:$0xff]  ;;  %v16_v2 = vld [vmem:[%s296_s1 + $0x10] sm:$0xff] }
   0x2   :  { %v179_v3 = vpack.c.bf16 %v15_v1, %v14_v0  ;;  %v17_v4 = vld [vmem:[%s296_s1 + $0x18] sm:$0xff]  ;;  %v18_v6 = vld [vmem:[%s296_s1 + $0x20] sm:$0xff]  ;;  %v19_v7 = vld [vmem:[%s296_s1 + $0x28] sm:$0xff] }
   0x3   :  { %v183_v5 = vpack.c.bf16 %v17_v4, %v16_v2  ;;  %v12_v8 = vld [vmem:[%s295_s0] sm:$0xff] }
   0x4   :  { %180 = vmatprep.subr.bf16.mxu0 %v179_v3 }
   0x5   :  { %7 = vsyncpa [#allocation3], 0  ;;  %182 = vmatpush3.bf16.msra.mxu0 %v179_v3  ;;  %176 = vmatprep.mubr.msk.f32.mxu0 %vm23_vm0, %v12_v8  ;;  %v187_v9 = vpack.c.bf16 %v19_v7, %v18_v6  ;;  %v20_v10 = vld [vmem:[%s296_s1 + $0x30] sm:$0xff]  ;;  %v21_v11 = vld [vmem:[%s296_s1 + $0x38] sm:$0xff]  ;;  %vm30_vm1 = vcmask 1040384   ;;  %vm111_vm2 = vcmask 97280  }
   0x6   :  { %184 = vmatprep.subr.bf16.mxu0 %v183_v5  ;;  %v191_v12 = vpack.c.bf16 %v21_v11, %v20_v10  ;;  %v22_v13 = vld [vmem:[%s296_s1 + $0x40] sm:$0x1]  ;;  %v13_v14 = vld [vmem:[%s295_s0 + $0x8] sm:$0xff]  ;;  %s226_s0 = smov [#allocation2]  }
   0x7   :  { %s133_s1 = sshll.u32 %s226_s0, 4  ;;  %s134_s1 = int_to_ptr.vmem [resolvable:$true] %s133_s1 }
   0x8   :  { %s202_s3 = scalar_lea.vmem %s134_s1, 256  ;;  %p207_p1 = scmp.lt.s32.totalorder %s134_s1, %s134_s1 }
   0x9   :  { %186 = vmatpush3.bf16.msra.mxu0 %v183_v5  ;;  %p203_p0 = scmp.ne.s32.totalorder %s134_s1, %s202_s3  ;;  %p208_p2 = scmp.lt.s32.totalorder %s202_s3, %s202_s3 }
   0xa   :  { %188 = vmatprep.subr.bf16.mxu0 %v187_v9 }
   0xb   :  { %p209_p3 = por %p208_p2, %p207_p1 }
   0xd   :  { %190 = vmatpush3.bf16.msra.mxu0 %v187_v9  ;;  %p210_p4 = pnand %p209_p3, %p203_p0 }
   0xe   :  { %192 = vmatprep.subr.bf16.mxu0 %v191_v12 }
  0x11   :  { %194 = vmatpush3.bf16.msra.mxu0 %v191_v12 }
  0x12   :  { %174 = vmatprep.subr.msk.mxu0 %vm30_vm1, %v22_v13 }
  0x15   :  { %175 = vmatpush3.msk.msra.mxu0 %vm30_vm1, %v22_v13 }
  0x16   :  { %177 = vmatmul.mubr.msk.f32.vlgmr.msra.gmra.mrb[0].mxu0 %vm23_vm0, %v13_v14 }
  0xe9   :  { %v178_v15 = vpop.f32.mrb[0].mxu0 }
  0xea   :  { %v100_v16 = vpop.f32.mrb[1].mxu0  ;;  %v110_v18 = vand.u32 2147483647, %v178_v15 }
  0xeb   :  { %v109_v17 = vand.u32 2147483647, %v100_v16 }
  0xec   :  { %v115_v20 = vsel %vm111_vm2, %v110_v18, -inf }
  0xed   :  { %v112_v19 = vsel %vm111_vm2, %v109_v17, -inf }
  0xee   :  { %113 = vmax.xlane.f32.xlu0 %v112_v19 }
  0xf2   :  { %116 = vmax.xlane.f32.xlu0 %v115_v20 }
 0x17b   :  { %v114_v21 = vpop.xlane.xlu0 %113 }
 0x17c   :  { %v118_v22 = vmax.f32 %v114_v21, 1e-12 }
 0x17e   :  { %198 = vrcp.f32 %v118_v22 }
 0x17f   :  { %v117_v23 = vpop.xlane.xlu0 %116 }
 0x180   :  { %v119_v24 = vmax.f32 %v117_v23, 1e-12 }
 0x182   :  { %200 = vrcp.f32 %v119_v24 }
 0x188   :  { %v199_v25 = vpop.eup %198 }
 0x189   :  { %v124_v26 = vmul.f32 %v199_v25, %v100_v16 }
 0x18b   :  { %126 = vst.msk [vmem:[#allocation2] sm:$0xff] %vm111_vm2, %v124_v26 }
 0x18c   :  { %v201_v27 = vpop.eup %200 }
 0x18d   :  { %v125_v28 = vmul.f32 %v201_v27, %v178_v15 }
 0x18f   :  { %127 = vst.msk [vmem:[#allocation2 + $0x8] sm:$0xff] %vm111_vm2, %v125_v28 }
 0x190   :  { %213 = shalt.err (!%p210_p4)
}
 0x191   :  { %s214_s6 = scalar_lea.hbm %s297_s2, 256 }
 0x192   :  { %p215_p5 = scmp.ne.s32.totalorder %s297_s2, %s214_s6  ;;  %p218_p6 = scmp.lt.u32.totalorder %s214_s6, %s297_s2 }
 0x194   :  { %p220_p7 = pnand %p218_p6, %p215_p5 }
 0x196   :  { %223 = shalt.err (!%p220_p7)
}
 0x197   :  { %s227_s11 = smov 128   ;;  %s228_s12 = smov 8  }
 0x198   :  { %139 = dma.vmem_to_hbm [thread:$0]  %s134_s1, 256, %s297_s2, [#allocation3], %s227_s11, %s227_s11, %s228_s12  }
 0x199   :  { %224 = dma.done.wait [#allocation3], 256  }
 0x19a   :  { %225 = vsyncadd [#allocation3], 4294967040 }
 0x19b   :  { %143 = vsyncpa [#allocation3], 1 }

</bundles_post_ra>
